<compile_context>
chip_gen: v5e
topology: v5e:2x2
jax: 0.10.0
libtpu: 0.0.40
codegen_flags: <defaults>
</compile_context>

<pallas_src>
import functools
import math

import jax
import jax.numpy as jnp
from jax.experimental import pallas as pl
from jax.experimental.pallas import tpu as pltpu


# ---------------------------------------------------------------------------
# Pass 1: per-(packed-channel) partial sums / sums-of-squares.
# ---------------------------------------------------------------------------
def _stats_kernel(x_ref, sum_out_ref, sq_out_ref, sum_acc, sq_acc, *,
                  tile_bt, tiles_per_split, total_rows, has_tail,
                  has_overhang):
    p = pl.program_id(0)          # split axis ("parallel", v7x megacore)
    i = pl.program_id(1)          # row-tile axis ("arbitrary" reduction)

    @pl.when(i == 0)
    def _init():
        sum_acc[...] = jnp.zeros_like(sum_acc)
        sq_acc[...] = jnp.zeros_like(sq_acc)

    def _accum_full():
        x = x_ref[...].astype(jnp.float32)
        # Reduce only over the leading (non-layout) axis: pure elementwise
        # vreg adds in the hot loop.
        sum_acc[...] += jnp.sum(x, axis=0)
        sq_acc[...] += jnp.sum(x * x, axis=0)

    if not (has_tail or has_overhang):
        _accum_full()
    else:
        row0 = (p * tiles_per_split + i) * tile_bt

        @pl.when(row0 + tile_bt <= total_rows)   # full in-range tile: fast path
        def _full():
            _accum_full()

        if has_tail:
            # Only the single partial tail tile pays this slower path.
            @pl.when(jnp.logical_and(row0 < total_rows,
                                     row0 + tile_bt > total_rows))
            def _tail():
                n_valid = total_rows - row0

                def body(r, carry):
                    xv = x_ref[r].astype(jnp.float32)
                    sum_acc[...] += xv
                    sq_acc[...] += xv * xv
                    return carry

                jax.lax.fori_loop(0, n_valid, body, 0)

    @pl.when(i == tiles_per_split - 1)
    def _finalize():
        # One cross-lane (XLU) collapse per split, off the hot loop.  Keep the
        # written block lane-dense (last dim 128) to avoid masked stores; the
        # wrapper reads lane 0 only.
        s1 = jnp.sum(sum_acc[...], axis=-1, keepdims=True)   # (C_pack, 1)
        s2 = jnp.sum(sq_acc[...], axis=-1, keepdims=True)
        sum_out_ref[...] = jnp.broadcast_to(s1[None], sum_out_ref.shape)
        sq_out_ref[...] = jnp.broadcast_to(s2[None], sq_out_ref.shape)


# ---------------------------------------------------------------------------
# Pass 2: y = x * scale + shift, scale/shift broadcast from (1, C_pack, 1).
# ---------------------------------------------------------------------------
def _norm_kernel(x_ref, scale_ref, shift_ref, o_ref):
    x = x_ref[...].astype(jnp.float32)
    o_ref[...] = (x * scale_ref[...] + shift_ref[...]).astype(o_ref.dtype)


def _vmem_plan():
    """(vmem_limit_bytes, target_tile_bytes) tuned per TPU generation."""
    try:
        cap = int(pltpu.get_tpu_info().vmem_capacity_bytes)
    except Exception:
        cap = None
    if cap is not None and cap >= 100 * 1024 * 1024:   # v5e / v6e: 128 MiB
        return 96 * 1024 * 1024, 8 * 1024 * 1024
    # v7x (64 MiB physical per TC) or unknown: stay conservative.
    return 48 * 1024 * 1024, 4 * 1024 * 1024


def _pick_tile_rows(n_rows, c, s, itemsize, target_bytes):
    """Largest row tile whose padded VMEM footprint stays near target_bytes."""
    sub = {4: 8, 2: 16, 1: 32}.get(itemsize, 8)        # sublane packing
    padded_c = -(-c // sub) * sub
    padded_s = -(-s // 128) * 128
    row_bytes = padded_c * padded_s * itemsize
    tile = max(1, min(n_rows, target_bytes // row_bytes))
    if tile >= 8:
        tile -= tile % 8
    return int(tile)


def batch_normal(x, *, eps=1e-5, max_tile_rows=None):
    """Forward pass of BatchNormal for x of shape (B, T, C, H, W)."""
    B, T, C, H, W = x.shape
    S = H * W
    BT = B * T
    itemsize = jnp.dtype(x.dtype).itemsize
    sub = {4: 8, 2: 16, 1: 32}.get(itemsize, 8)

    # Sublane packing: fold k consecutive (b, t) rows into the channel axis so
    # k*C fills whole sublane groups (a free reshape — the element order of
    # (BT, C, S) and (BT//k, k*C, S) is identical).
    k = sub // math.gcd(C, sub)
    if k > 1 and BT % k != 0:
        k = 1
    BT_packed = BT // k
    C_pack = k * C

    xf = x.reshape(BT_packed, C_pack, S)   # free view: no transpose, no copy

    vmem_limit, target_tile_bytes = _vmem_plan()
    tile_bt = _pick_tile_rows(BT_packed, C_pack, S, itemsize, target_tile_bytes)
    if max_tile_rows is not None:          # test hook: force small tiles
        tile_bt = max(1, min(tile_bt, max_tile_rows))

    n_row_blocks = -(-BT_packed // tile_bt)            # ceil
    # Always split the stats reduction 2 ways when possible so both v7x
    # TensorCores stream HBM; on 1-TC chips it is a harmless loop.
    n_split = 2 if n_row_blocks >= 2 else 1
    tiles_per_split = -(-n_row_blocks // n_split)      # ceil
    has_tail = (BT_packed % tile_bt) != 0
    has_overhang = n_split * tiles_per_split > n_row_blocks

    if has_overhang:
        def x_index_map(p, i):
            return (jnp.minimum(p * tiles_per_split + i, n_row_blocks - 1), 0, 0)
    else:
        def x_index_map(p, i):
            return (p * tiles_per_split + i, 0, 0)

    # ---- Pass 1: lane-collapsed per-channel partial sums ------------------
    psum, psq = pl.pallas_call(
        functools.partial(
            _stats_kernel,
            tile_bt=tile_bt,
            tiles_per_split=tiles_per_split,
            total_rows=BT_packed,
            has_tail=has_tail,
            has_overhang=has_overhang,
        ),
        out_shape=(
            jax.ShapeDtypeStruct((n_split, C_pack, 128), jnp.float32),
            jax.ShapeDtypeStruct((n_split, C_pack, 128), jnp.float32),
        ),
        grid_spec=pltpu.PrefetchScalarGridSpec(
            num_scalar_prefetch=0,
            grid=(n_split, tiles_per_split),
            in_specs=[pl.BlockSpec((tile_bt, C_pack, S), x_index_map)],
            out_specs=[
                pl.BlockSpec((1, C_pack, 128), lambda p, i: (p, 0, 0)),
                pl.BlockSpec((1, C_pack, 128), lambda p, i: (p, 0, 0)),
            ],
            scratch_shapes=[
                pltpu.VMEM((C_pack, S), jnp.float32),
                pltpu.VMEM((C_pack, S), jnp.float32),
            ],
        ),
        compiler_params=pltpu.CompilerParams(
            dimension_semantics=("parallel", "arbitrary"),
            vmem_limit_bytes=vmem_limit,
        ),
    )(xf)

    # ---- Tiny finalize in the wrapper (a few KB of work) -------------------
    inv_n = 1.0 / float(BT * S)            # exact in Python double precision
    s1 = jnp.sum(psum[:, :, 0], axis=0).reshape(k, C).sum(axis=0)   # (C,)
    s2 = jnp.sum(psq[:, :, 0], axis=0).reshape(k, C).sum(axis=0)    # (C,)
    mean = s1 * jnp.float32(inv_n)
    # Biased variance (PyTorch BatchNorm normalizes with 1/N variance);
    # clamp >= 0 against E[x^2]-E[x]^2 cancellation.
    var = jnp.maximum(s2 * jnp.float32(inv_n) - mean * mean, 0.0)
    rstd = jax.lax.rsqrt(var + jnp.float32(eps))
    # Packed channel j = k_idx*C + c picks up channel c's scale/shift.
    scale = jnp.tile(rstd, k).reshape(1, C_pack, 1)
    shift = jnp.tile(-mean * rstd, k).reshape(1, C_pack, 1)

    # ---- Pass 2: normalize (streaming, fully parallel) ---------------------
    yf = pl.pallas_call(
        _norm_kernel,
        out_shape=jax.ShapeDtypeStruct((BT_packed, C_pack, S), x.dtype),
        grid_spec=pltpu.PrefetchScalarGridSpec(
            num_scalar_prefetch=0,
            grid=(n_row_blocks,),
            in_specs=[
                pl.BlockSpec((tile_bt, C_pack, S), lambda i: (i, 0, 0)),
                pl.BlockSpec((1, C_pack, 1), lambda i: (0, 0, 0)),
                pl.BlockSpec((1, C_pack, 1), lambda i: (0, 0, 0)),
            ],
            out_specs=pl.BlockSpec((tile_bt, C_pack, S), lambda i: (i, 0, 0)),
        ),
        compiler_params=pltpu.CompilerParams(
            dimension_semantics=("parallel",),
            vmem_limit_bytes=vmem_limit,
        ),
    )(xf, scale, shift)

    return yf.reshape(B, T, C, H, W)    # free view back to (B, T, C, H, W)


def _reference(x, eps=1e-5):
    # Pure-JAX reference of the PyTorch module (training-mode batch stats).
    mean = jnp.mean(x, axis=(0, 1, 3, 4), keepdims=True)
    var = jnp.mean((x - mean) ** 2, axis=(0, 1, 3, 4), keepdims=True)
    return (x - mean) / jnp.sqrt(var + eps)


if __name__ == "__main__":
    root = jax.random.PRNGKey(0)
    k1, k2 = jax.random.split(root)

    # Case 1: the module's shape pattern; num_features = C = 4, H*W = 256.
    x1 = jax.random.normal(k1, (2, 3, 4, 16, 16), dtype=jnp.float32)
    y1 = jax.block_until_ready(batch_normal(x1))
    assert y1.shape == x1.shape and y1.dtype == x1.dtype
    err1 = float(jnp.max(jnp.abs(y1 - _reference(x1))))
    assert err1 < 2e-4, f"case 1 mismatch vs reference: max abs err = {err1}"

    # Case 2: ragged row count + odd tile count — exercises the pl.when tail
    # path, the always-2-way split with an overhang tile, and the unpacked
    # small-C path (C=3, S=64).
    x2 = jax.random.normal(k2, (2, 5, 3, 8, 8), dtype=jnp.float32)
    y2 = jax.block_until_ready(batch_normal(x2, max_tile_rows=4))
    assert y2.shape == x2.shape and y2.dtype == x2.dtype
    err2 = float(jnp.max(jnp.abs(y2 - _reference(x2))))
    assert err2 < 2e-4, f"case 2 mismatch vs reference: max abs err = {err2}"

    print("KERNEL_OK")
</pallas_src>

<mosaic_0001>
module attributes {stable_mosaic.version = 11 : i64} {
  func.func @_stats_kernel(%arg0: i32, %arg1: i32, %arg2: memref<3x8x256xf32, #tpu.memory_space<vmem>>, %arg3: memref<1x8x128xf32, #tpu.memory_space<vmem>>, %arg4: memref<1x8x128xf32, #tpu.memory_space<vmem>>, %arg5: memref<8x256xf32, #tpu.memory_space<vmem>>, %arg6: memref<8x256xf32, #tpu.memory_space<vmem>>) attributes {dimension_semantics = [#tpu.dimension_semantics<parallel>, #tpu.dimension_semantics<arbitrary>], iteration_bounds = array<i64: 1, 1>, scalar_prefetch = 0 : i64, scratch_operands = 2 : i64, tpu.core_type = #tpu.core_type<tc>, window_params = [{transform_indices = @transform_0, window_bounds = array<i64: 3, 8, 256>}, {transform_indices = @transform_1, window_bounds = array<i64: 1, 8, 128>}, {transform_indices = @transform_2, window_bounds = array<i64: 1, 8, 128>}]} {
    %c0_i32 = arith.constant 0 : i32
    %0 = arith.cmpi eq, %arg1, %c0_i32 : i32
    %1 = arith.extui %0 : i1 to i32
    %c0_i32_0 = arith.constant 0 : i32
    %2 = arith.cmpi ne, %1, %c0_i32_0 : i32
    scf.if %2 {
      %cst_14 = arith.constant 0.000000e+00 : f32
      %16 = vector.broadcast %cst_14 : f32 to vector<8x256xf32>
      %c0_15 = arith.constant 0 : index
      %c0_16 = arith.constant 0 : index
      %17 = vector.load %arg5[%c0_15, %c0_16] : memref<8x256xf32, #tpu.memory_space<vmem>>, vector<8x256xf32>
      tpu.vector_store %arg5[%c0_15, %c0_16], %16 {strides = array<i32>} : memref<8x256xf32, #tpu.memory_space<vmem>>, vector<8x256xf32>,
      %cst_17 = arith.constant 0.000000e+00 : f32
      %18 = vector.broadcast %cst_17 : f32 to vector<8x256xf32>
      %c0_18 = arith.constant 0 : index
      %c0_19 = arith.constant 0 : index
      %19 = vector.load %arg6[%c0_18, %c0_19] : memref<8x256xf32, #tpu.memory_space<vmem>>, vector<8x256xf32>
      tpu.vector_store %arg6[%c0_18, %c0_19], %18 {strides = array<i32>} : memref<8x256xf32, #tpu.memory_space<vmem>>, vector<8x256xf32>,
    } else {
    }
    %c0 = arith.constant 0 : index
    %c0_1 = arith.constant 0 : index
    %c0_2 = arith.constant 0 : index
    %3 = vector.load %arg2[%c0, %c0_1, %c0_2] : memref<3x8x256xf32, #tpu.memory_space<vmem>>, vector<3x8x256xf32>
    %c0_3 = arith.constant 0 : index
    %c0_4 = arith.constant 0 : index
    %4 = vector.load %arg5[%c0_3, %c0_4] : memref<8x256xf32, #tpu.memory_space<vmem>>, vector<8x256xf32>
    %cst = arith.constant dense<0.000000e+00> : vector<8x256xf32>
    %5 = vector.multi_reduction <add>, %3, %cst [0] : vector<3x8x256xf32> to vector<8x256xf32>
    %6 = arith.addf %4, %5 : vector<8x256xf32>
    %c0_5 = arith.constant 0 : index
    %c0_6 = arith.constant 0 : index
    %7 = vector.load %arg5[%c0_5, %c0_6] : memref<8x256xf32, #tpu.memory_space<vmem>>, vector<8x256xf32>
    tpu.vector_store %arg5[%c0_5, %c0_6], %6 {strides = array<i32>} : memref<8x256xf32, #tpu.memory_space<vmem>>, vector<8x256xf32>,
    %c0_7 = arith.constant 0 : index
    %c0_8 = arith.constant 0 : index
    %8 = vector.load %arg6[%c0_7, %c0_8] : memref<8x256xf32, #tpu.memory_space<vmem>>, vector<8x256xf32>
    %9 = arith.mulf %3, %3 : vector<3x8x256xf32>
    %cst_9 = arith.constant dense<0.000000e+00> : vector<8x256xf32>
    %10 = vector.multi_reduction <add>, %9, %cst_9 [0] : vector<3x8x256xf32> to vector<8x256xf32>
    %11 = arith.addf %8, %10 : vector<8x256xf32>
    %c0_10 = arith.constant 0 : index
    %c0_11 = arith.constant 0 : index
    %12 = vector.load %arg6[%c0_10, %c0_11] : memref<8x256xf32, #tpu.memory_space<vmem>>, vector<8x256xf32>
    tpu.vector_store %arg6[%c0_10, %c0_11], %11 {strides = array<i32>} : memref<8x256xf32, #tpu.memory_space<vmem>>, vector<8x256xf32>,
    %c0_i32_12 = arith.constant 0 : i32
    %13 = arith.cmpi eq, %arg1, %c0_i32_12 : i32
    %14 = arith.extui %13 : i1 to i32
    %c0_i32_13 = arith.constant 0 : i32
    %15 = arith.cmpi ne, %14, %c0_i32_13 : i32
    scf.if %15 {
      %c0_14 = arith.constant 0 : index
      %c0_15 = arith.constant 0 : index
      %16 = vector.load %arg5[%c0_14, %c0_15] : memref<8x256xf32, #tpu.memory_space<vmem>>, vector<8x256xf32>
      %cst_16 = arith.constant dense<0.000000e+00> : vector<8xf32>
      %17 = vector.multi_reduction <add>, %16, %cst_16 [1] : vector<8x256xf32> to vector<8xf32>
      %18 = vector.shape_cast %17 : vector<8xf32> to vector<8x1xf32>
      %c0_17 = arith.constant 0 : index
      %c0_18 = arith.constant 0 : index
      %19 = vector.load %arg6[%c0_17, %c0_18] : memref<8x256xf32, #tpu.memory_space<vmem>>, vector<8x256xf32>
      %cst_19 = arith.constant dense<0.000000e+00> : vector<8xf32>
      %20 = vector.multi_reduction <add>, %19, %cst_19 [1] : vector<8x256xf32> to vector<8xf32>
      %21 = vector.shape_cast %20 : vector<8xf32> to vector<8x1xf32>
      %22 = vector.shape_cast %18 : vector<8x1xf32> to vector<1x8x1xf32>
      %23 = vector.shape_cast %22 : vector<1x8x1xf32> to vector<1x8x1xf32>
      %24 = vector.broadcast %23 : vector<1x8x1xf32> to vector<1x8x128xf32>
      %c0_20 = arith.constant 0 : index
      %c0_21 = arith.constant 0 : index
      %c0_22 = arith.constant 0 : index
      %25 = vector.load %arg3[%c0_20, %c0_21, %c0_22] : memref<1x8x128xf32, #tpu.memory_space<vmem>>, vector<1x8x128xf32>
      tpu.vector_store %arg3[%c0_20, %c0_21, %c0_22], %24 {strides = array<i32>} : memref<1x8x128xf32, #tpu.memory_space<vmem>>, vector<1x8x128xf32>,
      %26 = vector.shape_cast %21 : vector<8x1xf32> to vector<1x8x1xf32>
      %27 = vector.shape_cast %26 : vector<1x8x1xf32> to vector<1x8x1xf32>
      %28 = vector.broadcast %27 : vector<1x8x1xf32> to vector<1x8x128xf32>
      %c0_23 = arith.constant 0 : index
      %c0_24 = arith.constant 0 : index
      %c0_25 = arith.constant 0 : index
      %29 = vector.load %arg4[%c0_23, %c0_24, %c0_25] : memref<1x8x128xf32, #tpu.memory_space<vmem>>, vector<1x8x128xf32>
      tpu.vector_store %arg4[%c0_23, %c0_24, %c0_25], %28 {strides = array<i32>} : memref<1x8x128xf32, #tpu.memory_space<vmem>>, vector<1x8x128xf32>,
    } else {
    }
    return
  }
  func.func @transform_0(%arg0: i32, %arg1: i32) -> (i32, i32, i32) {
    %c1_i32 = arith.constant 1 : i32
    %0 = arith.muli %arg0, %c1_i32 : i32
    %1 = arith.addi %0, %arg1 : i32
    %c0_i32 = arith.constant 0 : i32
    %c0_i32_0 = arith.constant 0 : i32
    %c0_i32_1 = arith.constant 0 : i32
    return %1, %c0_i32, %c0_i32_0 : i32, i32, i32
  }
  func.func @transform_1(%arg0: i32, %arg1: i32) -> (i32, i32, i32) {
    %c0_i32 = arith.constant 0 : i32
    %c0_i32_0 = arith.constant 0 : i32
    %c0_i32_1 = arith.constant 0 : i32
    return %arg0, %c0_i32, %c0_i32_0 : i32, i32, i32
  }
  func.func @transform_2(%arg0: i32, %arg1: i32) -> (i32, i32, i32) {
    %c0_i32 = arith.constant 0 : i32
    %c0_i32_0 = arith.constant 0 : i32
    %c0_i32_1 = arith.constant 0 : i32
    return %arg0, %c0_i32, %c0_i32_0 : i32, i32, i32
  }
}

</mosaic_0001>

<bundles_post_ra>
// kernel: tpu_custom_call.1
= control target key start
LH: loop header
LB: loop body
LE: loop exit
PB: predicated region body
PF: predicated region fallthrough
CT: control target
= control target key end

     0   :  { %8 = vsyncpa [#allocation5], 0  ;;  %s235_s0 = inlined_call_operand.hbm [shape: f32[3,8,256], index: 0, kind: input, shape index: {}]   ;;  %s236_s1 = inlined_call_operand.hbm [shape: f32[1,8,128], index: 1, kind: output, shape index: {0}]   ;;  %s237_s2 = inlined_call_operand.hbm [shape: f32[1,8,128], index: 2, kind: output, shape index: {1}]  }
   0x1   :  { %9 = vsyncpa [#allocation6], 0 }
   0x2   :  { %10 = vsyncpa [#allocation9], 0  ;;  %s20_s11 = sshll.u32 %s235_s0, 4  ;;  %s206_s12 = smov [#allocation4]   ;;  %s21_s11 = int_to_ptr.hbm [resolvable:$true] %s20_s11 }
   0x3   :  { %s22_s13 = sshll.u32 %s206_s12, 4  ;;  %s207_s14 = smov 256   ;;  %s23_s13 = int_to_ptr.vmem [resolvable:$true] %s22_s13 }
   0x4   :  { %s208_s15 = smov 16  }
   0x5   :  { %28 = dma.hbm_to_vmem [thread:$0]  %s21_s11, 768, %s23_s13, [#allocation5], %s207_s14, %s207_s14, %s208_s15  }
   0x6   :  { %200 = dma.done.wait [#allocation5], 768  }
   0x7   :  { %201 = vsyncadd [#allocation5], 4294966528  ;;  %v43_v0 = vld [vmem:[#allocation4] sm:$0xff]  ;;  %v44_v1 = vld [vmem:[#allocation4 + $0x8] sm:$0xff]  ;;  %s209_s0 = smov [#allocation7]   ;;  %s97_s19 = sshll.u32 %s236_s1, 4  ;;  %s98_s19 = int_to_ptr.hbm [resolvable:$true] %s97_s19 }
   0x8   :  { %v45_v2 = vld [vmem:[#allocation4 + $0x10] sm:$0xff]  ;;  %v46_v3 = vld [vmem:[#allocation4 + $0x18] sm:$0xff]  ;;  %v47_v4 = vld [vmem:[#allocation4 + $0x20] sm:$0xff]  ;;  %v61_v7 = vmul.f32 %v43_v0, %v43_v0  ;;  %v62_v8 = vmul.f32 %v44_v1, %v44_v1  ;;  %s95_s16 = sshll.u32 %s209_s0, 4  ;;  %s210_s20 = smov [#allocation8]   ;;  %s96_s16 = int_to_ptr.vmem [resolvable:$true] %s95_s16 }
   0x9   :  { %v48_v5 = vld [vmem:[#allocation4 + $0x28] sm:$0xff]  ;;  %v51_v6 = vadd.f32 %v45_v2, %v43_v0  ;;  %v63_v9 = vmul.f32 %v45_v2, %v45_v2  ;;  %v53_v10 = vadd.f32 %v46_v3, %v44_v1  ;;  %v64_v11 = vmul.f32 %v46_v3, %v46_v3  ;;  %s106_s21 = sshll.u32 %s210_s20, 4  ;;  %s108_s24 = sshll.u32 %s237_s2, 4  ;;  %s107_s21 = int_to_ptr.vmem [resolvable:$true] %s106_s21  ;;  %s109_s24 = int_to_ptr.hbm [resolvable:$true] %s108_s24 }
   0xa   :  { %v65_v13 = vmul.f32 %v47_v4, %v47_v4  ;;  %v66_v15 = vmul.f32 %v48_v5, %v48_v5 }
   0xb   :  { %v52_v12 = vadd.f32 %v51_v6, %v47_v4  ;;  %v54_v14 = vadd.f32 %v53_v10, %v48_v5  ;;  %v67_v16 = vadd.f32 %v63_v9, %v61_v7  ;;  %v69_v17 = vadd.f32 %v64_v11, %v62_v8 }
   0xd   :  { %v80_v18 = vadd.f32 %v54_v14, %v52_v12  ;;  %v68_v19 = vadd.f32 %v67_v16, %v65_v13  ;;  %v70_v20 = vadd.f32 %v69_v17, %v66_v15 }
   0xf   :  { %81 = vadd.xlane.f32.xlu0 %v80_v18  ;;  %v85_v21 = vadd.f32 %v70_v20, %v68_v19 }
  0x17   :  { %86 = vadd.xlane.f32.xlu0 %v85_v21 }
  0x82   :  { %v82_v22 = vpop.xlane.xlu0 %81 }
  0x83   :  { %88 = vst [vmem:[#allocation7] sm:$0xff] %v82_v22 }
  0x84   :  { %100 = dma.vmem_to_hbm [thread:$0]  %s96_s16, 128, %s98_s19, [#allocation6]  }
  0x8a   :  { %v87_v23 = vpop.xlane.xlu0 %86 }
  0x8b   :  { %89 = vst [vmem:[#allocation8] sm:$0xff] %v87_v23 }
  0x8c   :  { %111 = dma.vmem_to_hbm [thread:$0]  %s107_s21, 128, %s109_s24, [#allocation9]  }
  0x8d   :  { %202 = dma.done.wait [#allocation6], 128  }
  0x8e   :  { %203 = vsyncadd [#allocation6], 4294967168 }
  0x8f   :  { %204 = dma.done.wait [#allocation9], 128  }
  0x90   :  { %205 = vsyncadd [#allocation9], 4294967168 }
  0x91   :  { %120 = vsyncpa [#allocation5], 1 }
  0x92   :  { %121 = vsyncpa [#allocation6], 1 }
  0x93   :  { %122 = vsyncpa [#allocation9], 1 }

</bundles_post_ra>
